<compile_context>
chip_gen: v7x
topology: tpu7x:2x2x1
jax: 0.10.0
libtpu: 0.0.40
codegen_flags: <defaults>
</compile_context>

<pallas_src>
import functools

import jax
import jax.numpy as jnp
from jax.experimental import pallas as pl
from jax.experimental.pallas import tpu as pltpu

_NEG_BIG = -1e30  # masked logits: exp underflows to 0, 0 * _NEG_BIG stays finite


def _cdiv(a, b):
    return -(-a // b)


def _round_up(x, m):
    return ((x + m - 1) // m) * m


def _ce_ml_kernel(inp_ref, tgt_ref, out_ref,
                  m_sc, l_sc, st_sc, stx_sc,
                  *, batch, num_classes, tile_b, tile_k,
                  mask_rows, mask_cols):
    # Grid position / extent.  Hoisted to the top of the body: pallas
    # primitives must not be traced inside pl.when bodies (they end up inside
    # a lax.cond branch and have no lowering there in interpret mode).
    bi = pl.program_id(0)
    ki = pl.program_id(1)
    nk = pl.num_programs(1)

    # ---- init per-row accumulators at the first class chunk -------------
    @pl.when(ki == 0)
    def _init():
        m_sc[...] = jnp.full_like(m_sc, jnp.finfo(jnp.float32).min)
        l_sc[...] = jnp.zeros_like(l_sc)
        st_sc[...] = jnp.zeros_like(st_sc)
        stx_sc[...] = jnp.zeros_like(stx_sc)

    x = inp_ref[...].astype(jnp.float32)      # (tile_b, tile_k)
    t = tgt_ref[...].astype(jnp.float32)      # (tile_b, tile_k)

    if mask_cols:  # static: only when K % tile_k != 0
        col = jax.lax.broadcasted_iota(jnp.int32, x.shape, 1) + ki * tile_k
        valid = col < num_classes
        x = jnp.where(valid, x, _NEG_BIG)
        t = jnp.where(valid, t, 0.0)

    # ---- streaming (online) log-sum-exp + weighted sums -----------------
    chunk_max = jnp.max(x, axis=1, keepdims=True)             # (tile_b, 1)
    m_new = jnp.maximum(m_sc[...], chunk_max)
    alpha = jnp.exp(m_sc[...] - m_new)
    l_sc[...] = alpha * l_sc[...] + jnp.sum(jnp.exp(x - m_new),
                                            axis=1, keepdims=True)
    m_sc[...] = m_new
    st_sc[...] = st_sc[...] + jnp.sum(t, axis=1, keepdims=True)
    stx_sc[...] = stx_sc[...] + jnp.sum(t * x, axis=1, keepdims=True)

    # ---- finalize per-row loss on the last class chunk -------------------
    @pl.when(ki == nk - 1)
    def _finalize():
        lse = m_sc[...] + jnp.log(l_sc[...])                   # (tile_b, 1)
        loss_rows = lse - stx_sc[...] / st_sc[...]             # (tile_b, 1)
        if mask_rows:  # static: only when B % tile_b != 0
            row_ids = (jax.lax.broadcasted_iota(jnp.int32, (tile_b, 1), 0)
                       + bi * tile_b)                          # bi captured
            loss_rows = jnp.where(row_ids < batch, loss_rows, 0.0)
        out_ref[...] = loss_rows


def cross_entropy_multilabel(inputs, targets, *, tile_b=None, tile_k=None,
                             vmem_limit_bytes=48 * 1024 * 1024):
    """inputs: (B, K) logits; targets: (B, K) soft labels. Returns scalar f32.

    bf16 inputs/targets are recommended for large problems (kernel accumulates
    in f32 internally; this kernel is HBM-bandwidth-bound).
    """
    assert inputs.ndim == 2 and inputs.shape == targets.shape
    B, K = inputs.shape
    itemsize = max(jnp.dtype(inputs.dtype).itemsize,
                   jnp.dtype(targets.dtype).itemsize)

    # ---- class (lane) tiling: wide chunks, minimal padded tail ------------
    max_tile_k = 2048
    if tile_k is None:
        if K <= max_tile_k:
            tile_k = K                           # full dim (any width allowed)
        else:
            # even-ish split into 128-multiples -> small padded tail
            tile_k = _round_up(_cdiv(K, _cdiv(K, max_tile_k)), 128)

    # ---- batch (sublane) tiling from a VMEM budget -------------------------
    if tile_b is None:
        # leave ~8 MiB headroom under the scoped limit for misc. scratch
        tile_budget = max(vmem_limit_bytes - 8 * 1024 * 1024, 4 * 1024 * 1024)
        bytes_per_row = (4 * tile_k * itemsize    # 2 inputs x 2 pipeline bufs
                         + 4 * tile_k * 4         # in-kernel f32 temporaries
                         + 4 * 128 * 4)           # 4 lane-padded accumulators
        cap = max(8, (tile_budget // bytes_per_row) // 8 * 8)
        cap = min(cap, 1024)
        if B > 8:
            # keep >= 2 batch tiles so v7x can shard the parallel axis
            cap = min(cap, max(8, _round_up(_cdiv(B, 2), 8)))
        tile_b = B if B <= cap else cap          # full dim, or a multiple of 8

    grid_b = _cdiv(B, tile_b)
    grid_k = _cdiv(K, tile_k)
    mask_rows = (B % tile_b) != 0
    mask_cols = (K % tile_k) != 0

    kernel = functools.partial(
        _ce_ml_kernel, batch=B, num_classes=K, tile_b=tile_b, tile_k=tile_k,
        mask_rows=mask_rows, mask_cols=mask_cols)

    per_row = pl.pallas_call(
        kernel,
        out_shape=jax.ShapeDtypeStruct((grid_b * tile_b, 1), jnp.float32),
        grid_spec=pltpu.PrefetchScalarGridSpec(
            num_scalar_prefetch=0,
            grid=(grid_b, grid_k),
            in_specs=[
                pl.BlockSpec((tile_b, tile_k), lambda bi, ki: (bi, ki)),
                pl.BlockSpec((tile_b, tile_k), lambda bi, ki: (bi, ki)),
            ],
            out_specs=pl.BlockSpec((tile_b, 1), lambda bi, ki: (bi, 0)),
            scratch_shapes=[pltpu.VMEM((tile_b, 1), jnp.float32)] * 4,
        ),
        compiler_params=pltpu.CompilerParams(
            dimension_semantics=("parallel", "arbitrary"),
            vmem_limit_bytes=vmem_limit_bytes,
        ),
    )(inputs, targets)

    # Padded rows were written as 0; divide by B exactly once here.
    return jnp.sum(per_row) / B


def _reference(inputs, targets):
    # pure-JAX reference of the PyTorch forward
    log_probs = jax.nn.log_softmax(inputs.astype(jnp.float32), axis=1)
    t = targets.astype(jnp.float32)
    t = t / jnp.sum(t, axis=1, keepdims=True)
    return jnp.sum(jnp.mean(-t * log_probs, axis=0))


if __name__ == "__main__":
    key = jax.random.PRNGKey(0)
    k1, k2, k3, k4 = jax.random.split(key, 4)

    # ---- primary small case (lane/sublane aligned) -----------------------
    B, K = 8, 128
    inputs = jax.random.normal(k1, (B, K), dtype=jnp.float32)
    targets = jax.random.uniform(k2, (B, K), dtype=jnp.float32,
                                 minval=0.0, maxval=1.0) + 1e-3
    loss = cross_entropy_multilabel(inputs, targets)
    jax.block_until_ready(loss)
    ref = _reference(inputs, targets)
    assert jnp.allclose(loss, ref, rtol=1e-5, atol=1e-5), (loss, ref)

    # ---- ragged case, auto tiling: exercises batch-tile remainder --------
    B2, K2 = 20, 320
    inputs2 = jax.random.normal(k3, (B2, K2), dtype=jnp.float32)
    targets2 = jax.random.uniform(k4, (B2, K2), dtype=jnp.float32,
                                  minval=0.0, maxval=1.0) + 1e-3
    loss2a = cross_entropy_multilabel(inputs2, targets2)
    jax.block_until_ready(loss2a)
    ref2 = _reference(inputs2, targets2)
    assert jnp.allclose(loss2a, ref2, rtol=1e-5, atol=1e-5), (loss2a, ref2)

    # ---- ragged case, explicit small tiles: exercises row + column masks --
    loss2b = cross_entropy_multilabel(inputs2, targets2, tile_b=8, tile_k=128)
    jax.block_until_ready(loss2b)
    assert jnp.allclose(loss2b, ref2, rtol=1e-5, atol=1e-5), (loss2b, ref2)

    # ---- bf16 inputs (halved HBM bytes), f32 accumulation inside ----------
    loss3 = cross_entropy_multilabel(inputs.astype(jnp.bfloat16),
                                     targets.astype(jnp.bfloat16))
    jax.block_until_ready(loss3)
    ref3 = _reference(inputs.astype(jnp.bfloat16).astype(jnp.float32),
                      targets.astype(jnp.bfloat16).astype(jnp.float32))
    assert jnp.allclose(loss3, ref3, rtol=1e-3, atol=1e-3), (loss3, ref3)

    print("KERNEL_OK")
</pallas_src>

<mosaic_0001>
module attributes {stable_mosaic.version = 11 : i64} {
  func.func @_ce_ml_kernel(%arg0: i32, %arg1: i32, %arg2: memref<8x128xf32, #tpu.memory_space<vmem>>, %arg3: memref<8x128xf32, #tpu.memory_space<vmem>>, %arg4: memref<8x1xf32, #tpu.memory_space<vmem>>, %arg5: memref<8x1xf32, #tpu.memory_space<vmem>>, %arg6: memref<8x1xf32, #tpu.memory_space<vmem>>, %arg7: memref<8x1xf32, #tpu.memory_space<vmem>>, %arg8: memref<8x1xf32, #tpu.memory_space<vmem>>) attributes {dimension_semantics = [#tpu.dimension_semantics<parallel>, #tpu.dimension_semantics<arbitrary>], iteration_bounds = array<i64: 1, 1>, scalar_prefetch = 0 : i64, scratch_operands = 4 : i64, tpu.core_type = #tpu.core_type<tc>, window_params = [{transform_indices = @transform_0, window_bounds = array<i64: 8, 128>}, {transform_indices = @transform_1, window_bounds = array<i64: 8, 128>}, {transform_indices = @transform_2, window_bounds = array<i64: 8, 1>}]} {
    %c0_i32 = arith.constant 0 : i32
    %0 = arith.cmpi eq, %arg1, %c0_i32 : i32
    %1 = arith.extui %0 : i1 to i32
    %c0_i32_0 = arith.constant 0 : i32
    %2 = arith.cmpi ne, %1, %c0_i32_0 : i32
    scf.if %2 {
      %cst_27 = arith.constant -3.40282347E+38 : f32
      %36 = vector.broadcast %cst_27 : f32 to vector<8x1xf32>
      %c0_28 = arith.constant 0 : index
      %c0_29 = arith.constant 0 : index
      %37 = vector.load %arg5[%c0_28, %c0_29] : memref<8x1xf32, #tpu.memory_space<vmem>>, vector<8x1xf32>
      tpu.vector_store %arg5[%c0_28, %c0_29], %36 {strides = array<i32>} : memref<8x1xf32, #tpu.memory_space<vmem>>, vector<8x1xf32>,
      %cst_30 = arith.constant 0.000000e+00 : f32
      %38 = vector.broadcast %cst_30 : f32 to vector<8x1xf32>
      %c0_31 = arith.constant 0 : index
      %c0_32 = arith.constant 0 : index
      %39 = vector.load %arg6[%c0_31, %c0_32] : memref<8x1xf32, #tpu.memory_space<vmem>>, vector<8x1xf32>
      tpu.vector_store %arg6[%c0_31, %c0_32], %38 {strides = array<i32>} : memref<8x1xf32, #tpu.memory_space<vmem>>, vector<8x1xf32>,
      %cst_33 = arith.constant 0.000000e+00 : f32
      %40 = vector.broadcast %cst_33 : f32 to vector<8x1xf32>
      %c0_34 = arith.constant 0 : index
      %c0_35 = arith.constant 0 : index
      %41 = vector.load %arg7[%c0_34, %c0_35] : memref<8x1xf32, #tpu.memory_space<vmem>>, vector<8x1xf32>
      tpu.vector_store %arg7[%c0_34, %c0_35], %40 {strides = array<i32>} : memref<8x1xf32, #tpu.memory_space<vmem>>, vector<8x1xf32>,
      %cst_36 = arith.constant 0.000000e+00 : f32
      %42 = vector.broadcast %cst_36 : f32 to vector<8x1xf32>
      %c0_37 = arith.constant 0 : index
      %c0_38 = arith.constant 0 : index
      %43 = vector.load %arg8[%c0_37, %c0_38] : memref<8x1xf32, #tpu.memory_space<vmem>>, vector<8x1xf32>
      tpu.vector_store %arg8[%c0_37, %c0_38], %42 {strides = array<i32>} : memref<8x1xf32, #tpu.memory_space<vmem>>, vector<8x1xf32>,
    } else {
    }
    %c0 = arith.constant 0 : index
    %c0_1 = arith.constant 0 : index
    %3 = vector.load %arg2[%c0, %c0_1] : memref<8x128xf32, #tpu.memory_space<vmem>>, vector<8x128xf32>
    %c0_2 = arith.constant 0 : index
    %c0_3 = arith.constant 0 : index
    %4 = vector.load %arg3[%c0_2, %c0_3] : memref<8x128xf32, #tpu.memory_space<vmem>>, vector<8x128xf32>
    %cst = arith.constant dense<0xFF800000> : vector<8xf32>
    %5 = vector.multi_reduction <maximumf>, %3, %cst [1] : vector<8x128xf32> to vector<8xf32>
    %6 = vector.shape_cast %5 : vector<8xf32> to vector<8x1xf32>
    %c0_4 = arith.constant 0 : index
    %c0_5 = arith.constant 0 : index
    %7 = vector.load %arg5[%c0_4, %c0_5] : memref<8x1xf32, #tpu.memory_space<vmem>>, vector<8x1xf32>
    %8 = arith.maximumf %7, %6 : vector<8x1xf32>
    %c0_6 = arith.constant 0 : index
    %c0_7 = arith.constant 0 : index
    %9 = vector.load %arg5[%c0_6, %c0_7] : memref<8x1xf32, #tpu.memory_space<vmem>>, vector<8x1xf32>
    %10 = arith.subf %9, %8 : vector<8x1xf32>
    %11 = math.exp %10 : vector<8x1xf32>
    %c0_8 = arith.constant 0 : index
    %c0_9 = arith.constant 0 : index
    %12 = vector.load %arg6[%c0_8, %c0_9] : memref<8x1xf32, #tpu.memory_space<vmem>>, vector<8x1xf32>
    %13 = arith.mulf %11, %12 : vector<8x1xf32>
    %14 = vector.broadcast %8 : vector<8x1xf32> to vector<8x128xf32>
    %15 = arith.subf %3, %14 : vector<8x128xf32>
    %16 = math.exp %15 : vector<8x128xf32>
    %cst_10 = arith.constant dense<0.000000e+00> : vector<8xf32>
    %17 = vector.multi_reduction <add>, %16, %cst_10 [1] : vector<8x128xf32> to vector<8xf32>
    %18 = vector.shape_cast %17 : vector<8xf32> to vector<8x1xf32>
    %19 = arith.addf %13, %18 : vector<8x1xf32>
    %c0_11 = arith.constant 0 : index
    %c0_12 = arith.constant 0 : index
    %20 = vector.load %arg6[%c0_11, %c0_12] : memref<8x1xf32, #tpu.memory_space<vmem>>, vector<8x1xf32>
    tpu.vector_store %arg6[%c0_11, %c0_12], %19 {strides = array<i32>} : memref<8x1xf32, #tpu.memory_space<vmem>>, vector<8x1xf32>,
    %c0_13 = arith.constant 0 : index
    %c0_14 = arith.constant 0 : index
    %21 = vector.load %arg5[%c0_13, %c0_14] : memref<8x1xf32, #tpu.memory_space<vmem>>, vector<8x1xf32>
    tpu.vector_store %arg5[%c0_13, %c0_14], %8 {strides = array<i32>} : memref<8x1xf32, #tpu.memory_space<vmem>>, vector<8x1xf32>,
    %c0_15 = arith.constant 0 : index
    %c0_16 = arith.constant 0 : index
    %22 = vector.load %arg7[%c0_15, %c0_16] : memref<8x1xf32, #tpu.memory_space<vmem>>, vector<8x1xf32>
    %cst_17 = arith.constant dense<0.000000e+00> : vector<8xf32>
    %23 = vector.multi_reduction <add>, %4, %cst_17 [1] : vector<8x128xf32> to vector<8xf32>
    %24 = vector.shape_cast %23 : vector<8xf32> to vector<8x1xf32>
    %25 = arith.addf %22, %24 : vector<8x1xf32>
    %c0_18 = arith.constant 0 : index
    %c0_19 = arith.constant 0 : index
    %26 = vector.load %arg7[%c0_18, %c0_19] : memref<8x1xf32, #tpu.memory_space<vmem>>, vector<8x1xf32>
    tpu.vector_store %arg7[%c0_18, %c0_19], %25 {strides = array<i32>} : memref<8x1xf32, #tpu.memory_space<vmem>>, vector<8x1xf32>,
    %c0_20 = arith.constant 0 : index
    %c0_21 = arith.constant 0 : index
    %27 = vector.load %arg8[%c0_20, %c0_21] : memref<8x1xf32, #tpu.memory_space<vmem>>, vector<8x1xf32>
    %28 = arith.mulf %4, %3 : vector<8x128xf32>
    %cst_22 = arith.constant dense<0.000000e+00> : vector<8xf32>
    %29 = vector.multi_reduction <add>, %28, %cst_22 [1] : vector<8x128xf32> to vector<8xf32>
    %30 = vector.shape_cast %29 : vector<8xf32> to vector<8x1xf32>
    %31 = arith.addf %27, %30 : vector<8x1xf32>
    %c0_23 = arith.constant 0 : index
    %c0_24 = arith.constant 0 : index
    %32 = vector.load %arg8[%c0_23, %c0_24] : memref<8x1xf32, #tpu.memory_space<vmem>>, vector<8x1xf32>
    tpu.vector_store %arg8[%c0_23, %c0_24], %31 {strides = array<i32>} : memref<8x1xf32, #tpu.memory_space<vmem>>, vector<8x1xf32>,
    %c0_i32_25 = arith.constant 0 : i32
    %33 = arith.cmpi eq, %arg1, %c0_i32_25 : i32
    %34 = arith.extui %33 : i1 to i32
    %c0_i32_26 = arith.constant 0 : i32
    %35 = arith.cmpi ne, %34, %c0_i32_26 : i32
    scf.if %35 {
      %c0_27 = arith.constant 0 : index
      %c0_28 = arith.constant 0 : index
      %36 = vector.load %arg5[%c0_27, %c0_28] : memref<8x1xf32, #tpu.memory_space<vmem>>, vector<8x1xf32>
      %c0_29 = arith.constant 0 : index
      %c0_30 = arith.constant 0 : index
      %37 = vector.load %arg6[%c0_29, %c0_30] : memref<8x1xf32, #tpu.memory_space<vmem>>, vector<8x1xf32>
      %38 = math.log %37 : vector<8x1xf32>
      %39 = arith.addf %36, %38 : vector<8x1xf32>
      %c0_31 = arith.constant 0 : index
      %c0_32 = arith.constant 0 : index
      %40 = vector.load %arg8[%c0_31, %c0_32] : memref<8x1xf32, #tpu.memory_space<vmem>>, vector<8x1xf32>
      %c0_33 = arith.constant 0 : index
      %c0_34 = arith.constant 0 : index
      %41 = vector.load %arg7[%c0_33, %c0_34] : memref<8x1xf32, #tpu.memory_space<vmem>>, vector<8x1xf32>
      %42 = arith.divf %40, %41 : vector<8x1xf32>
      %43 = arith.subf %39, %42 : vector<8x1xf32>
      %c0_35 = arith.constant 0 : index
      %c0_36 = arith.constant 0 : index
      %44 = vector.load %arg4[%c0_35, %c0_36] : memref<8x1xf32, #tpu.memory_space<vmem>>, vector<8x1xf32>
      tpu.vector_store %arg4[%c0_35, %c0_36], %43 {strides = array<i32>} : memref<8x1xf32, #tpu.memory_space<vmem>>, vector<8x1xf32>,
    } else {
    }
    return
  }
  func.func @transform_0(%arg0: i32, %arg1: i32) -> (i32, i32) {
    %c0_i32 = arith.constant 0 : i32
    return %arg0, %arg1 : i32, i32
  }
  func.func @transform_1(%arg0: i32, %arg1: i32) -> (i32, i32) {
    %c0_i32 = arith.constant 0 : i32
    return %arg0, %arg1 : i32, i32
  }
  func.func @transform_2(%arg0: i32, %arg1: i32) -> (i32, i32) {
    %c0_i32 = arith.constant 0 : i32
    %c0_i32_0 = arith.constant 0 : i32
    return %arg0, %c0_i32 : i32, i32
  }
}

</mosaic_0001>

<bundles_post_ra>
// kernel: tpu_custom_call.1
= control target key start
LH: loop header
LB: loop body
LE: loop exit
PB: predicated region body
PF: predicated region fallthrough
CT: control target
= control target key end

     0   :  { %7 = vsyncpa [#allocation7], 0  ;;  %s218_s0 = inlined_call_operand.hbm [shape: f32[8,128], index: 0, kind: input, shape index: {}]   ;;  %s219_s1 = inlined_call_operand.hbm [shape: f32[8,128], index: 1, kind: input, shape index: {}]   ;;  %s220_s2 = inlined_call_operand.vmem [shape: f32[8,1], index: 2, kind: output, shape index: {}]  }
   0x1   :  { %8 = vsyncpa [#allocation9], 0  ;;  %s162_s9 = smov [#allocation6]   ;;  %s163_s11 = smov [#allocation8]  }
   0x2   :  { %s15_s10 = sshll.u32 %s162_s9, 4  ;;  %s25_s12 = sshll.u32 %s163_s11, 4  ;;  %s16_s10 = int_to_ptr.vmem [resolvable:$true] %s15_s10  ;;  %s26_s12 = int_to_ptr.vmem [resolvable:$true] %s25_s12 }
   0x3   :  { %s114_s15 = scalar_lea.hbm %s218_s0, 128 }
   0x4   :  { %p115_p0 = scmp.ne.s32.totalorder %s218_s0, %s114_s15  ;;  %p118_p1 = scmp.lt.u32.totalorder %s114_s15, %s218_s0 }
   0x6   :  { %p120_p2 = pnand %p118_p1, %p115_p0 }
   0x8   :  { %123 = shalt.err (!%p120_p2)
}
   0x9   :  { %s124_s20 = scalar_lea.vmem %s16_s10, 128  ;;  %p129_p4 = scmp.lt.s32.totalorder %s16_s10, %s16_s10 }
   0xa   :  { %p125_p3 = scmp.ne.s32.totalorder %s16_s10, %s124_s20  ;;  %p130_p5 = scmp.lt.s32.totalorder %s124_s20, %s124_s20 }
   0xc   :  { %p131_p6 = por %p130_p5, %p129_p4 }
   0xe   :  { %p132_p7 = pnand %p131_p6, %p125_p3 }
  0x10   :  { %135 = shalt.err (!%p132_p7)
}
  0x11   :  { %18 = dma.hbm_to_vmem [thread:$0]  %s218_s0, 128, %s16_s10, [#allocation7]  }
  0x12   :  { %s136_s25 = scalar_lea.hbm %s219_s1, 128 }
  0x13   :  { %p137_p8 = scmp.ne.s32.totalorder %s219_s1, %s136_s25  ;;  %p140_p9 = scmp.lt.u32.totalorder %s136_s25, %s219_s1 }
  0x15   :  { %p142_p10 = pnand %p140_p9, %p137_p8 }
  0x17   :  { %145 = shalt.err (!%p142_p10)
}
  0x18   :  { %s146_s30 = scalar_lea.vmem %s26_s12, 128  ;;  %p151_p12 = scmp.lt.s32.totalorder %s26_s12, %s26_s12 }
  0x19   :  { %p147_p11 = scmp.ne.s32.totalorder %s26_s12, %s146_s30  ;;  %p152_p13 = scmp.lt.s32.totalorder %s146_s30, %s146_s30 }
  0x1b   :  { %p153_p0 = por %p152_p13, %p151_p12 }
  0x1d   :  { %p154_p1 = pnand %p153_p0, %p147_p11 }
  0x1f   :  { %157 = shalt.err (!%p154_p1)
}
  0x20   :  { %28 = dma.hbm_to_vmem [thread:$0]  %s219_s1, 128, %s26_s12, [#allocation9]  }
  0x21   :  { %158 = dma.done.wait [#allocation7], 128  }
  0x22   :  { %159 = vsyncadd [#allocation7], 4294967168 }
  0x23   :  { %160 = dma.done.wait [#allocation9], 128  }
  0x24   :  { %161 = vsyncadd [#allocation9], 4294967168  ;;  %vm39_vm0 = vcmask 7168   ;;  %v164_v0 = vmov -3.4028235e+38   ;;  %v44_v1 = vld [vmem:[#allocation6] sm:$0xff] }
  0x25   :  { %40 = vst.msk [vmem:[#allocation2] sm:$0xff] %vm39_vm0, %v164_v0  ;;  %46 = vmax.xlane.f32.xlu0 %v44_v1  ;;  %v165_v2 = vmov 0   ;;  %v166_v3 = vmov 0.0   ;;  %v45_v12 = vld [vmem:[#allocation8] sm:$0xff] }
  0x26   :  { %105 = vset.pattern.permute.xlu0 %v165_v2  ;;  %41 = vst.msk [vmem:[#allocation3] sm:$0xff] %vm39_vm0, %v166_v3  ;;  %42 = vst.msk [vmem:[#allocation4] sm:$0xff] %vm39_vm0, %v166_v3  ;;  %v75_v13 = vmul.f32 %v45_v12, %v44_v1 }
  0x27   :  { %43 = vst.msk [vmem:[#allocation5] sm:$0xff] %vm39_vm0, %v166_v3 }
  0x2c   :  { %v48_v4 = vld [vmem:[#allocation2] sm:$0xff] }
  0x2d   :  { %v53_v16 = vld [vmem:[#allocation3] sm:$0xff]  ;;  %v69_v20 = vld [vmem:[#allocation4] sm:$0xff] }
  0x2e   :  { %v74_v23 = vld [vmem:[#allocation5] sm:$0xff] }
  0xb2   :  { %v47_v5 = vpop.xlane.xlu0 %46 }
  0xb3   :  { %v49_v6 = vmax.f32 %v48_v4, %v47_v5 }
  0xb5   :  { %v50_v7 = vsub.f32 %v48_v4, %v49_v6  ;;  %68 = vst.msk [vmem:[#allocation2] sm:$0xff] %vm39_vm0, %v49_v6  ;;  %57 = vperm.xlu0 %105, %v49_v6  }
  0xb7   :  { %v51_v14 = vmul.f32 1.442695, %v50_v7 }
  0xbc   :  { %v83_v32 = vld [vmem:[#allocation2] sm:$0xff] }
 0x134   :  { %v58_v8 = vpop.permute.xlu0 %57 }
 0x135   :  { %v60_v9 = vsub.f32 %v44_v1, %v58_v8 }
 0x137   :  { %v61_v10 = vmul.f32 1.442695, %v60_v9 }
 0x139   :  { %106 = vpow2.f32 %v61_v10 }
 0x13a   :  { %108 = vpow2.f32 %v51_v14 }
 0x143   :  { %v107_v11 = vpop.eup %106 }
 0x144   :  { %63 = vadd.xlane.f32.xlu1 %v107_v11  ;;  %v109_v15 = vpop.eup %108 }
 0x145   :  { %v54_v17 = vmul.f32 %v109_v15, %v53_v16 }
 0x148   :  { %70 = vadd.xlane.f32.xlu1 %v45_v12 }
 0x14c   :  { %76 = vadd.xlane.f32.xlu1 %v75_v13 }
 0x1d1   :  { %v64_v18 = vpop.xlane.xlu1 %63 }
 0x1d2   :  { %v65_v19 = vadd.f32 %v64_v18, %v54_v17 }
 0x1d4   :  { %67 = vst.msk [vmem:[#allocation3] sm:$0xff] %vm39_vm0, %v65_v19 }
 0x1d5   :  { %v71_v21 = vpop.xlane.xlu1 %70 }
 0x1d6   :  { %v72_v22 = vadd.f32 %v71_v21, %v69_v20 }
 0x1d8   :  { %73 = vst.msk [vmem:[#allocation4] sm:$0xff] %vm39_vm0, %v72_v22 }
 0x1d9   :  { %v77_v24 = vpop.xlane.xlu1 %76 }
 0x1da   :  { %v78_v25 = vadd.f32 %v77_v24, %v74_v23 }
 0x1db   :  { %v84_v26 = vld [vmem:[#allocation3] sm:$0xff] }
 0x1dc   :  { %110 = vlog2.f32 %v84_v26  ;;  %79 = vst.msk [vmem:[#allocation5] sm:$0xff] %vm39_vm0, %v78_v25 }
 0x1df   :  { %v89_v27 = vld [vmem:[#allocation4] sm:$0xff] }
 0x1e0   :  { %112 = vrcp.f32 %v89_v27 }
 0x1e3   :  { %v88_v30 = vld [vmem:[#allocation5] sm:$0xff] }
 0x1e6   :  { %v111_v28 = vpop.eup %110 }
 0x1e7   :  { %v86_v29 = vmul.f32 0.6931472, %v111_v28 }
 0x1e9   :  { %v87_v33 = vadd.f32 %v86_v29, %v83_v32 }
 0x1ea   :  { %v113_v31 = vpop.eup %112 }
 0x1eb   :  { %v91_v34 = vmul.f32 %v113_v31, %v88_v30 }
 0x1ed   :  { %v92_v35 = vsub.f32 %v87_v33, %v91_v34 }
 0x1ef   :  { %93 = vst.msk [vmem:[%s220_s2] sm:$0xff] %vm39_vm0, %v92_v35 }
 0x1f0   :  { %98 = vsyncpa [#allocation7], 1 }
 0x1f1   :  { %99 = vsyncpa [#allocation9], 1 }

</bundles_post_ra>
